<compile_context>
chip_gen: v7x
topology: tpu7x:2x2x1
jax: 0.10.0
libtpu: 0.0.40
codegen_flags: <defaults>
</compile_context>

<pallas_src>
import functools
import math

import jax
import jax.numpy as jnp
from jax import lax
from jax.experimental import pallas as pl
from jax.experimental.pallas import tpu as pltpu


def _round_up(x: int, m: int) -> int:
    return (x + m - 1) // m * m


def _rain_robust_loss_kernel(
    hit_ref,                 # SMEM (grid_i, grid_j) int32 positive-block table
    q_ref, k_ref,            # pre-normalized, pre-scaled feature blocks
    o_ref,                   # (TBq, 1) per-row loss
    m_sc, l_sc, p_sc,        # online-softmax accumulators (VMEM scratch)
    *, batch_size, n_valid, block_q, block_k, resident_key,
):
    i = pl.program_id(0)     # query row-block (parallel axis)
    j = pl.program_id(1)     # key block (reduction axis, last)
    neg_big = jnp.float32(-1e30)

    @pl.when(j == 0)
    def _():
        # -1e30 (not -inf) keeps alpha/exp finite even for fully-masked blocks.
        m_sc[...] = jnp.full_like(m_sc, neg_big)
        l_sc[...] = jnp.zeros_like(l_sc)
        p_sc[...] = jnp.zeros_like(p_sc)

    q = q_ref[...]
    if resident_key:
        k = k_ref[pl.ds(pl.multiple_of(j * block_k, block_k), block_k), :]
    else:
        k = k_ref[...]

    # Operands were pre-normalized and pre-scaled by T**-0.5 in the wrapper,
    # so this dot already yields cos_sim / T.  Contract last dims directly
    # (no explicit transpose); f32 accumulation on the MXU.
    sim = lax.dot_general(
        q, k, dimension_numbers=(((1,), (1,)), ((), ())),
        preferred_element_type=jnp.float32,
    )                                                         # [TBq, TBk]

    # Thin iotas + broadcast compares; no N x N index planes.
    row_g = i * block_q + lax.broadcasted_iota(jnp.int32, (block_q, 1), 0)
    col_g = j * block_k + lax.broadcasted_iota(jnp.int32, (1, block_k), 1)
    diag = row_g == col_g
    col_pad = col_g >= n_valid
    sim_off = jnp.where(jnp.logical_or(diag, col_pad), neg_big, sim)

    # Online logsumexp over the key axis (exp(-1e30 - m) underflows to 0, so
    # masked entries never contribute once a real max has been seen).
    m_prev = m_sc[...]
    m_new = jnp.maximum(m_prev, jnp.max(sim_off, axis=1, keepdims=True))
    alpha = jnp.exp(m_prev - m_new)
    l_sc[...] = alpha * l_sc[...] + jnp.sum(jnp.exp(sim_off - m_new),
                                            axis=1, keepdims=True)
    m_sc[...] = m_new

    # Positive logit (cross-entropy target 0 after the torch flatten): for row
    # r it is column r + batch_size if r < batch_size else r % batch_size.
    # Only key blocks flagged in the prefetched hit table pay for the
    # select + row-reduce.
    @pl.when(hit_ref[i, j] > 0)
    def _():
        pos_col = jnp.where(row_g < batch_size, row_g + batch_size,
                            row_g % batch_size)
        p_sc[...] += jnp.sum(jnp.where(col_g == pos_col, sim, jnp.float32(0.0)),
                             axis=1, keepdims=True)

    @pl.when(j == pl.num_programs(1) - 1)
    def _():
        loss_row = m_sc[...] + jnp.log(l_sc[...]) - p_sc[...]
        o_ref[...] = jnp.where(row_g < n_valid, loss_row, jnp.float32(0.0))


def rain_robust_loss(features, *, batch_size, n_views, temperature=0.07,
                     block_q=None, block_k=None, matmul_dtype=jnp.bfloat16,
                     resident_key=None, resident_key_max_bytes=8 * 1024 * 1024):
    """features: [batch_size * n_views, D].  Returns the scalar InfoNCE loss.

    matmul_dtype=jnp.bfloat16 (default) halves operand HBM traffic and uses
    bf16 MXU operands with f32 accumulation; pass jnp.float32 for bit-tight
    numerics (the 1/T scale amplifies operand rounding ~14x at T=0.07).
    """
    N, D = features.shape
    assert N == batch_size * n_views, "rows must equal batch_size * n_views"
    assert n_views >= 2, "InfoNCE needs n_views >= 2 (one positive per row)"

    # Tile defaults: 256-wide key tiles fill v6e/v7x's 256-wide MXU; keep 128
    # elsewhere (v5e's 4x128^2 MXU is already saturated by a 128-wide output).
    if block_k is None:
        try:
            kind = jax.devices()[0].device_kind.lower()
        except Exception:
            kind = ""
        block_k = 256 if ("v6" in kind or "v7" in kind) else 128
    if block_q is None:
        block_q = 128

    Dp = _round_up(D, 128)
    Nr8 = _round_up(N, 8)
    if Nr8 <= block_q:                       # tiny problem: single tile
        bq = bk = Nr8
    else:
        bq, bk = block_q, block_k
    N_pad = _round_up(N, bq * bk // math.gcd(bq, bk))
    grid_i, grid_j = N_pad // bq, N_pad // bk

    # Hoisted normalization (F.normalize, eps=1e-12) + fold T**-0.5 into both
    # operands once; cast to the MXU operand dtype AFTER the scale; pad with
    # zeros (zero rows/cols change neither norms nor dot products).
    x = features.astype(jnp.float32)
    norm = jnp.sqrt(jnp.sum(x * x, axis=1, keepdims=True))
    x = x / jnp.maximum(norm, jnp.float32(1e-12))
    x = x * jnp.float32(1.0 / math.sqrt(float(temperature)))
    x = x.astype(matmul_dtype)
    if (N_pad, Dp) != (N, D):
        x = jnp.pad(x, ((0, N_pad - N), (0, Dp - D)))

    # (grid_i, grid_j) table: 1 iff some valid row in row-block i has its
    # positive column in key-block j.  Scalar-prefetched into SMEM.
    rows = jnp.arange(N_pad, dtype=jnp.int32)
    pos_col = jnp.where(rows < batch_size, rows + batch_size, rows % batch_size)
    hit = jnp.zeros((grid_i, grid_j), jnp.int32).at[
        rows // bq, pos_col // bk].add((rows < N).astype(jnp.int32))

    itemsize = jnp.dtype(matmul_dtype).itemsize
    if resident_key is None:
        resident_key = (grid_j > 1
                        and N_pad * Dp * itemsize <= resident_key_max_bytes)
    if resident_key:
        k_spec = pl.BlockSpec((N_pad, Dp), lambda i, j, hit: (0, 0))
        k_bytes = 2 * N_pad * Dp * itemsize
    else:
        k_spec = pl.BlockSpec((bk, Dp), lambda i, j, hit: (j, 0))
        k_bytes = 2 * bk * Dp * itemsize

    # Explicit VMEM budget (v7x: 64 MiB physical / 32 MiB default scoped;
    # BlockSpec double-buffers each input block).
    est = 2 * bq * Dp * itemsize + k_bytes + 8 * bq * bk + 64 * bq + (1 << 20)
    vmem_limit = int(min(max(2 * est, 32 * 1024 * 1024), 64 * 1024 * 1024))

    kernel = functools.partial(
        _rain_robust_loss_kernel,
        batch_size=batch_size, n_valid=N,
        block_q=bq, block_k=bk, resident_key=resident_key,
    )

    per_row = pl.pallas_call(
        kernel,
        out_shape=jax.ShapeDtypeStruct((N_pad, 1), jnp.float32),
        grid_spec=pltpu.PrefetchScalarGridSpec(
            num_scalar_prefetch=1,
            grid=(grid_i, grid_j),
            in_specs=[
                pl.BlockSpec((bq, Dp), lambda i, j, hit: (i, 0)),  # query rows
                k_spec,                                            # key rows
            ],
            out_specs=pl.BlockSpec((bq, 1), lambda i, j, hit: (i, 0)),
            scratch_shapes=[pltpu.VMEM((bq, 1), jnp.float32)] * 3,  # m, l, pos
        ),
        compiler_params=pltpu.CompilerParams(
            dimension_semantics=("parallel", "arbitrary"),
            vmem_limit_bytes=vmem_limit),
    )(hit, x, x)

    # Mean reduction of nn.CrossEntropyLoss (tiny N-element sum kept in the
    # wrapper: the row-block axis is megacore-parallel, so an in-kernel shared
    # scalar accumulator would race).
    return jnp.sum(per_row[:N, 0]) / jnp.float32(N)


def _reference_loss(features, *, batch_size, n_views, temperature=0.07):
    """Pure-JAX reference mirroring PyTorch info_nce_loss + CrossEntropyLoss."""
    N, _ = features.shape
    labels = jnp.concatenate([jnp.arange(batch_size)] * n_views, axis=0)
    label_mat = labels[None, :] == labels[:, None]
    xn = features / jnp.maximum(
        jnp.linalg.norm(features, axis=1, keepdims=True), 1e-12)
    sim = jnp.matmul(xn, xn.T, precision=lax.Precision.HIGHEST)
    eye = jnp.eye(N, dtype=bool)
    label_off = label_mat[~eye].reshape(N, N - 1)
    sim_off = sim[~eye].reshape(N, N - 1)
    pos = sim_off[label_off].reshape(N, -1)
    neg = sim_off[~label_off].reshape(N, -1)
    logits = jnp.concatenate([pos, neg], axis=1) / temperature
    logp = jax.nn.log_softmax(logits, axis=1)    # target index 0 for every row
    return -jnp.mean(logp[:, 0])


if __name__ == "__main__":
    key = jax.random.PRNGKey(0)
    k1, k2, k3 = jax.random.split(key, 3)

    # 1) Tiny shape, f32 MXU operands (bit-tight) + default bf16 operands.
    bs, nv, d, t = 4, 2, 32, 0.07
    feats = jax.random.normal(k1, (bs * nv, d), dtype=jnp.float32)
    ref = _reference_loss(feats, batch_size=bs, n_views=nv, temperature=t)
    out = jax.block_until_ready(
        rain_robust_loss(feats, batch_size=bs, n_views=nv, temperature=t,
                         matmul_dtype=jnp.float32))
    assert jnp.allclose(out, ref, rtol=1e-4, atol=1e-4), (out, ref)
    out_bf16 = jax.block_until_ready(
        rain_robust_loss(feats, batch_size=bs, n_views=nv, temperature=t))
    assert jnp.allclose(out_bf16, ref, rtol=5e-2, atol=5e-2), (out_bf16, ref)

    # 2) n_views = 3 (multiple positives; target stays the first positive).
    bs, nv, d, t = 3, 3, 48, 0.1
    feats = jax.random.normal(k2, (bs * nv, d), dtype=jnp.float32)
    ref = _reference_loss(feats, batch_size=bs, n_views=nv, temperature=t)
    out = jax.block_until_ready(
        rain_robust_loss(feats, batch_size=bs, n_views=nv, temperature=t,
                         matmul_dtype=jnp.float32))
    assert jnp.allclose(out, ref, rtol=1e-4, atol=1e-4), (out, ref)

    # 3) Multi-block grid: online logsumexp across key blocks, hit-table
    #    guard, VMEM-resident key path, and row/column padding.
    bs, nv, d, t = 160, 2, 64, 0.07
    feats = jax.random.normal(k3, (bs * nv, d), dtype=jnp.float32)
    ref = _reference_loss(feats, batch_size=bs, n_views=nv, temperature=t)
    out = jax.block_until_ready(
        rain_robust_loss(feats, batch_size=bs, n_views=nv, temperature=t,
                         matmul_dtype=jnp.float32))
    assert jnp.allclose(out, ref, rtol=1e-3, atol=1e-3), (out, ref)

    print("KERNEL_OK")
</pallas_src>

<mosaic_0001>
module attributes {stable_mosaic.version = 11 : i64} {
  func.func @_rain_robust_loss_kernel(%arg0: i32, %arg1: i32, %arg2: memref<1x1xi32, #tpu.memory_space<smem>>, %arg3: memref<8x128xf32, #tpu.memory_space<vmem>>, %arg4: memref<8x128xf32, #tpu.memory_space<vmem>>, %arg5: memref<8x1xf32, #tpu.memory_space<vmem>>, %arg6: memref<8x1xf32, #tpu.memory_space<vmem>>, %arg7: memref<8x1xf32, #tpu.memory_space<vmem>>, %arg8: memref<8x1xf32, #tpu.memory_space<vmem>>) attributes {dimension_semantics = [#tpu.dimension_semantics<parallel>, #tpu.dimension_semantics<arbitrary>], iteration_bounds = array<i64: 1, 1>, scalar_prefetch = 1 : i64, scratch_operands = 3 : i64, tpu.core_type = #tpu.core_type<tc>, window_params = [{transform_indices = @transform_0, window_bounds = array<i64: 8, 128>}, {transform_indices = @transform_1, window_bounds = array<i64: 8, 128>}, {transform_indices = @transform_2, window_bounds = array<i64: 8, 1>}]} {
    %c0_i32 = arith.constant 0 : i32
    %0 = arith.cmpi eq, %arg1, %c0_i32 : i32
    %1 = arith.extui %0 : i1 to i32
    %cst = arith.constant -1.000000e+30 : f32
    %c0_i32_0 = arith.constant 0 : i32
    %2 = arith.cmpi ne, %1, %c0_i32_0 : i32
    scf.if %2 {
      %48 = vector.broadcast %cst : f32 to vector<8x1xf32>
      %c0_22 = arith.constant 0 : index
      %c0_23 = arith.constant 0 : index
      %49 = vector.load %arg6[%c0_22, %c0_23] : memref<8x1xf32, #tpu.memory_space<vmem>>, vector<8x1xf32>
      tpu.vector_store %arg6[%c0_22, %c0_23], %48 {strides = array<i32>} : memref<8x1xf32, #tpu.memory_space<vmem>>, vector<8x1xf32>,
      %cst_24 = arith.constant 0.000000e+00 : f32
      %50 = vector.broadcast %cst_24 : f32 to vector<8x1xf32>
      %c0_25 = arith.constant 0 : index
      %c0_26 = arith.constant 0 : index
      %51 = vector.load %arg7[%c0_25, %c0_26] : memref<8x1xf32, #tpu.memory_space<vmem>>, vector<8x1xf32>
      tpu.vector_store %arg7[%c0_25, %c0_26], %50 {strides = array<i32>} : memref<8x1xf32, #tpu.memory_space<vmem>>, vector<8x1xf32>,
      %cst_27 = arith.constant 0.000000e+00 : f32
      %52 = vector.broadcast %cst_27 : f32 to vector<8x1xf32>
      %c0_28 = arith.constant 0 : index
      %c0_29 = arith.constant 0 : index
      %53 = vector.load %arg8[%c0_28, %c0_29] : memref<8x1xf32, #tpu.memory_space<vmem>>, vector<8x1xf32>
      tpu.vector_store %arg8[%c0_28, %c0_29], %52 {strides = array<i32>} : memref<8x1xf32, #tpu.memory_space<vmem>>, vector<8x1xf32>,
    } else {
    }
    %c0 = arith.constant 0 : index
    %c0_1 = arith.constant 0 : index
    %3 = vector.load %arg3[%c0, %c0_1] : memref<8x128xf32, #tpu.memory_space<vmem>>, vector<8x128xf32>
    %c0_2 = arith.constant 0 : index
    %c0_3 = arith.constant 0 : index
    %4 = vector.load %arg4[%c0_2, %c0_3] : memref<8x128xf32, #tpu.memory_space<vmem>>, vector<8x128xf32>
    %cst_4 = arith.constant dense<0.000000e+00> : vector<8x8xf32>
    %5 = tpu.matmul %3, %4, %cst_4 {dimension_numbers = #tpu.dot_dimension_numbers<[1], [1], [0], [0], [0, 0, 1, 0], [], []>} : vector<8x128xf32>, vector<8x128xf32>, vector<8x8xf32> -> vector<8x8xf32>
    %c8_i32 = arith.constant 8 : i32
    %6 = arith.muli %arg0, %c8_i32 : i32
    %7 = tpu.iota {dimensions = array<i32: 0>} : vector<8x1xi32>
    %8 = vector.broadcast %6 : i32 to vector<8x1xi32>
    %9 = arith.addi %8, %7 : vector<8x1xi32>
    %c8_i32_5 = arith.constant 8 : i32
    %10 = arith.muli %arg1, %c8_i32_5 : i32
    %11 = tpu.iota {dimensions = array<i32: 1>} : vector<1x8xi32>
    %12 = vector.broadcast %10 : i32 to vector<1x8xi32>
    %13 = arith.addi %12, %11 : vector<1x8xi32>
    %14 = vector.broadcast %9 : vector<8x1xi32> to vector<8x8xi32>
    %15 = vector.broadcast %13 : vector<1x8xi32> to vector<8x8xi32>
    %16 = arith.cmpi eq, %14, %15 : vector<8x8xi32>
    %c8_i32_6 = arith.constant 8 : i32
    %17 = vector.broadcast %c8_i32_6 : i32 to vector<1x8xi32>
    %18 = arith.cmpi sge, %13, %17 : vector<1x8xi32>
    %19 = vector.broadcast %18 : vector<1x8xi1> to vector<8x8xi1>
    %20 = arith.ori %16, %19 : vector<8x8xi1>
    %cst_7 = arith.constant -1.000000e+30 : f32
    %21 = vector.broadcast %cst_7 : f32 to vector<8x8xf32>
    %22 = arith.select %20, %21, %5 : vector<8x8xi1>, vector<8x8xf32>
    %c0_8 = arith.constant 0 : index
    %c0_9 = arith.constant 0 : index
    %23 = vector.load %arg6[%c0_8, %c0_9] : memref<8x1xf32, #tpu.memory_space<vmem>>, vector<8x1xf32>
    %cst_10 = arith.constant dense<0xFF800000> : vector<8xf32>
    %24 = vector.multi_reduction <maximumf>, %22, %cst_10 [1] : vector<8x8xf32> to vector<8xf32>
    %25 = vector.shape_cast %24 : vector<8xf32> to vector<8x1xf32>
    %26 = arith.maximumf %23, %25 : vector<8x1xf32>
    %27 = arith.subf %23, %26 : vector<8x1xf32>
    %28 = math.exp %27 : vector<8x1xf32>
    %c0_11 = arith.constant 0 : index
    %c0_12 = arith.constant 0 : index
    %29 = vector.load %arg7[%c0_11, %c0_12] : memref<8x1xf32, #tpu.memory_space<vmem>>, vector<8x1xf32>
    %30 = arith.mulf %28, %29 : vector<8x1xf32>
    %31 = vector.broadcast %26 : vector<8x1xf32> to vector<8x8xf32>
    %32 = arith.subf %22, %31 : vector<8x8xf32>
    %33 = math.exp %32 : vector<8x8xf32>
    %cst_13 = arith.constant dense<0.000000e+00> : vector<8xf32>
    %34 = vector.multi_reduction <add>, %33, %cst_13 [1] : vector<8x8xf32> to vector<8xf32>
    %35 = vector.shape_cast %34 : vector<8xf32> to vector<8x1xf32>
    %36 = arith.addf %30, %35 : vector<8x1xf32>
    %c0_14 = arith.constant 0 : index
    %c0_15 = arith.constant 0 : index
    %37 = vector.load %arg7[%c0_14, %c0_15] : memref<8x1xf32, #tpu.memory_space<vmem>>, vector<8x1xf32>
    tpu.vector_store %arg7[%c0_14, %c0_15], %36 {strides = array<i32>} : memref<8x1xf32, #tpu.memory_space<vmem>>, vector<8x1xf32>,
    %c0_16 = arith.constant 0 : index
    %c0_17 = arith.constant 0 : index
    %38 = vector.load %arg6[%c0_16, %c0_17] : memref<8x1xf32, #tpu.memory_space<vmem>>, vector<8x1xf32>
    tpu.vector_store %arg6[%c0_16, %c0_17], %26 {strides = array<i32>} : memref<8x1xf32, #tpu.memory_space<vmem>>, vector<8x1xf32>,
    %39 = arith.index_cast %arg0 : i32 to index
    %40 = arith.index_cast %arg1 : i32 to index
    %41 = memref.load %arg2[%39, %40] : memref<1x1xi32, #tpu.memory_space<smem>>
    %c0_i32_18 = arith.constant 0 : i32
    %42 = arith.cmpi sgt, %41, %c0_i32_18 : i32
    %43 = arith.extui %42 : i1 to i32
    %c0_i32_19 = arith.constant 0 : i32
    %44 = arith.cmpi ne, %43, %c0_i32_19 : i32
    scf.if %44 {
      %c4_i32 = arith.constant 4 : i32
      %48 = vector.broadcast %c4_i32 : i32 to vector<8x1xi32>
      %49 = arith.cmpi slt, %9, %48 : vector<8x1xi32>
      %c4_i32_22 = arith.constant 4 : i32
      %50 = vector.broadcast %c4_i32_22 : i32 to vector<8x1xi32>
      %51 = arith.addi %9, %50 : vector<8x1xi32>
      %c4_i32_23 = arith.constant 4 : i32
      %c0_i32_24 = arith.constant 0 : i32
      %52 = arith.cmpi eq, %c4_i32_23, %c0_i32_24 : i32
      %c1_i32 = arith.constant 1 : i32
      %53 = arith.select %52, %c1_i32, %c4_i32_23 : i32
      %54 = vector.broadcast %53 : i32 to vector<8x1xi32>
      %55 = arith.remsi %9, %54 : vector<8x1xi32>
      %c0_i32_25 = arith.constant 0 : i32
      %56 = vector.broadcast %c0_i32_25 : i32 to vector<8x1xi32>
      %57 = arith.cmpi ne, %55, %56 : vector<8x1xi32>
      %c0_i32_26 = arith.constant 0 : i32
      %58 = vector.broadcast %c0_i32_26 : i32 to vector<8x1xi32>
      %59 = arith.cmpi slt, %55, %58 : vector<8x1xi32>
      %c0_i32_27 = arith.constant 0 : i32
      %60 = arith.cmpi slt, %53, %c0_i32_27 : i32
      %61 = vector.broadcast %60 : i1 to vector<8x1xi1>
      %62 = vector.broadcast %61 : vector<8x1xi1> to vector<8x1xi1>
      %63 = arith.xori %59, %62 : vector<8x1xi1>
      %64 = arith.andi %63, %57 : vector<8x1xi1>
      %65 = vector.broadcast %53 : i32 to vector<8x1xi32>
      %66 = arith.addi %55, %65 : vector<8x1xi32>
      %67 = arith.select %64, %66, %55 : vector<8x1xi1>, vector<8x1xi32>
      %68 = arith.select %49, %51, %67 : vector<8x1xi1>, vector<8x1xi32>
      %c0_28 = arith.constant 0 : index
      %c0_29 = arith.constant 0 : index
      %69 = vector.load %arg8[%c0_28, %c0_29] : memref<8x1xf32, #tpu.memory_space<vmem>>, vector<8x1xf32>
      %70 = vector.broadcast %13 : vector<1x8xi32> to vector<8x8xi32>
      %71 = vector.broadcast %68 : vector<8x1xi32> to vector<8x8xi32>
      %72 = arith.cmpi eq, %70, %71 : vector<8x8xi32>
      %cst_30 = arith.constant 0.000000e+00 : f32
      %73 = vector.broadcast %cst_30 : f32 to vector<8x8xf32>
      %74 = arith.select %72, %5, %73 : vector<8x8xi1>, vector<8x8xf32>
      %cst_31 = arith.constant dense<0.000000e+00> : vector<8xf32>
      %75 = vector.multi_reduction <add>, %74, %cst_31 [1] : vector<8x8xf32> to vector<8xf32>
      %76 = vector.shape_cast %75 : vector<8xf32> to vector<8x1xf32>
      %77 = arith.addf %69, %76 : vector<8x1xf32>
      %c0_32 = arith.constant 0 : index
      %c0_33 = arith.constant 0 : index
      %78 = vector.load %arg8[%c0_32, %c0_33] : memref<8x1xf32, #tpu.memory_space<vmem>>, vector<8x1xf32>
      tpu.vector_store %arg8[%c0_32, %c0_33], %77 {strides = array<i32>} : memref<8x1xf32, #tpu.memory_space<vmem>>, vector<8x1xf32>,
    } else {
    }
    %c0_i32_20 = arith.constant 0 : i32
    %45 = arith.cmpi eq, %arg1, %c0_i32_20 : i32
    %46 = arith.extui %45 : i1 to i32
    %c0_i32_21 = arith.constant 0 : i32
    %47 = arith.cmpi ne, %46, %c0_i32_21 : i32
    scf.if %47 {
      %c0_22 = arith.constant 0 : index
      %c0_23 = arith.constant 0 : index
      %48 = vector.load %arg6[%c0_22, %c0_23] : memref<8x1xf32, #tpu.memory_space<vmem>>, vector<8x1xf32>
      %c0_24 = arith.constant 0 : index
      %c0_25 = arith.constant 0 : index
      %49 = vector.load %arg7[%c0_24, %c0_25] : memref<8x1xf32, #tpu.memory_space<vmem>>, vector<8x1xf32>
      %50 = math.log %49 : vector<8x1xf32>
      %51 = arith.addf %48, %50 : vector<8x1xf32>
      %c0_26 = arith.constant 0 : index
      %c0_27 = arith.constant 0 : index
      %52 = vector.load %arg8[%c0_26, %c0_27] : memref<8x1xf32, #tpu.memory_space<vmem>>, vector<8x1xf32>
      %53 = arith.subf %51, %52 : vector<8x1xf32>
      %c8_i32_28 = arith.constant 8 : i32
      %54 = vector.broadcast %c8_i32_28 : i32 to vector<8x1xi32>
      %55 = arith.cmpi slt, %9, %54 : vector<8x1xi32>
      %cst_29 = arith.constant 0.000000e+00 : f32
      %56 = vector.broadcast %cst_29 : f32 to vector<8x1xf32>
      %57 = arith.select %55, %53, %56 : vector<8x1xi1>, vector<8x1xf32>
      %c0_30 = arith.constant 0 : index
      %c0_31 = arith.constant 0 : index
      %58 = vector.load %arg5[%c0_30, %c0_31] : memref<8x1xf32, #tpu.memory_space<vmem>>, vector<8x1xf32>
      tpu.vector_store %arg5[%c0_30, %c0_31], %57 {strides = array<i32>} : memref<8x1xf32, #tpu.memory_space<vmem>>, vector<8x1xf32>,
    } else {
    }
    return
  }
  func.func @transform_0(%arg0: i32, %arg1: i32, %arg2: memref<1x1xi32, #tpu.memory_space<smem>>) -> (i32, i32) {
    %c0_i32 = arith.constant 0 : i32
    %c0_i32_0 = arith.constant 0 : i32
    return %arg0, %c0_i32 : i32, i32
  }
  func.func @transform_1(%arg0: i32, %arg1: i32, %arg2: memref<1x1xi32, #tpu.memory_space<smem>>) -> (i32, i32) {
    %c0_i32 = arith.constant 0 : i32
    %c0_i32_0 = arith.constant 0 : i32
    return %arg1, %c0_i32 : i32, i32
  }
  func.func @transform_2(%arg0: i32, %arg1: i32, %arg2: memref<1x1xi32, #tpu.memory_space<smem>>) -> (i32, i32) {
    %c0_i32 = arith.constant 0 : i32
    %c0_i32_0 = arith.constant 0 : i32
    return %arg0, %c0_i32 : i32, i32
  }
}

</mosaic_0001>

<bundles_post_ra>
// kernel: tpu_custom_call.1
= control target key start
LH: loop header
LB: loop body
LE: loop exit
PB: predicated region body
PF: predicated region fallthrough
CT: control target
= control target key end

     0   :  { %9 = vsyncpa [#allocation8], 0  ;;  %s344_s0 = inlined_call_operand.<no memory space> [shape: s32[1,1], index: 0, kind: input, shape index: {}]   ;;  %s345_s1 = inlined_call_operand.hbm [shape: f32[8,128], index: 1, kind: input, shape index: {}]   ;;  %s346_s2 = inlined_call_operand.hbm [shape: f32[8,128], index: 2, kind: input, shape index: {}]   ;;  %s347_s3 = inlined_call_operand.vmem [shape: f32[8,1], index: 3, kind: output, shape index: {}]  }
   0x1   :  { %10 = vsyncpa [#allocation10], 0  ;;  %s278_s12 = smov [#allocation7]   ;;  %s279_s14 = smov [#allocation9]  }
   0x2   :  { %s17_s13 = sshll.u32 %s278_s12, 4  ;;  %s27_s15 = sshll.u32 %s279_s14, 4  ;;  %s18_s13 = int_to_ptr.vmem [resolvable:$true] %s17_s13  ;;  %s28_s15 = int_to_ptr.vmem [resolvable:$true] %s27_s15 }
   0x3   :  { %s230_s18 = scalar_lea.hbm %s345_s1, 128 }
   0x4   :  { %p231_p0 = scmp.ne.s32.totalorder %s345_s1, %s230_s18  ;;  %p234_p1 = scmp.lt.u32.totalorder %s230_s18, %s345_s1 }
   0x6   :  { %p236_p2 = pnand %p234_p1, %p231_p0 }
   0x8   :  { %239 = shalt.err (!%p236_p2)
}
   0x9   :  { %s240_s23 = scalar_lea.vmem %s18_s13, 128  ;;  %p245_p4 = scmp.lt.s32.totalorder %s18_s13, %s18_s13 }
   0xa   :  { %p241_p3 = scmp.ne.s32.totalorder %s18_s13, %s240_s23  ;;  %p246_p5 = scmp.lt.s32.totalorder %s240_s23, %s240_s23 }
   0xc   :  { %p247_p6 = por %p246_p5, %p245_p4 }
   0xe   :  { %p248_p7 = pnand %p247_p6, %p241_p3 }
  0x10   :  { %251 = shalt.err (!%p248_p7)
}
  0x11   :  { %20 = dma.hbm_to_vmem [thread:$0]  %s345_s1, 128, %s18_s13, [#allocation8]  }
  0x12   :  { %s252_s28 = scalar_lea.hbm %s346_s2, 128 }
  0x13   :  { %p253_p8 = scmp.ne.s32.totalorder %s346_s2, %s252_s28  ;;  %p256_p9 = scmp.lt.u32.totalorder %s252_s28, %s346_s2 }
  0x15   :  { %p258_p10 = pnand %p256_p9, %p253_p8 }
  0x17   :  { %261 = shalt.err (!%p258_p10)
}
  0x18   :  { %s262_s6 = scalar_lea.vmem %s28_s15, 128  ;;  %p267_p12 = scmp.lt.s32.totalorder %s28_s15, %s28_s15 }
  0x19   :  { %p263_p11 = scmp.ne.s32.totalorder %s28_s15, %s262_s6  ;;  %p268_p13 = scmp.lt.s32.totalorder %s262_s6, %s262_s6 }
  0x1b   :  { %p269_p0 = por %p268_p13, %p267_p12 }
  0x1d   :  { %p270_p1 = pnand %p269_p0, %p263_p11 }
  0x1f   :  { %273 = shalt.err (!%p270_p1)
}
  0x20   :  { %30 = dma.hbm_to_vmem [thread:$0]  %s346_s2, 128, %s28_s15, [#allocation10]  }
  0x21   :  { %274 = dma.done.wait [#allocation8], 128  }
  0x22   :  { %275 = vsyncadd [#allocation8], 4294967168 }
  0x23   :  { %276 = dma.done.wait [#allocation10], 128  }
  0x24   :  { %277 = vsyncadd [#allocation10], 4294967168  ;;  %vm41_vm0 = vcmask 7168   ;;  %v280_v0 = vmov 0.0   ;;  %vm281_vm1 = vmmov 0   ;;  %v46_v1 = vld [vmem:[#allocation9] sm:$0xff]  ;;  %v118_v4 = vlaneseq }
  0x25   :  { %43 = vst.msk [vmem:[#allocation3] sm:$0xff] %vm41_vm0, %v280_v0  ;;  %44 = vst.msk [vmem:[#allocation4] sm:$0xff] %vm41_vm0, %v280_v0  ;;  %212 = vmatprep.subr.mxu0 %v280_v0  ;;  %214 = vmatprep.mubr.msk.f32.mxu0 %vm281_vm1, %v280_v0  ;;  %v45_v2 = vld [vmem:[#allocation7] sm:$0xff]  ;;  %v282_v3 = vmov -1e+30   ;;  %vm134_vm5 = vcmask 64512  }
  0x26   :  { %213 = vmatpush3.xpose.msra.mxu0 %v46_v1  ;;  %42 = vst.msk [vmem:[#allocation2] sm:$0xff] %vm41_vm0, %v282_v3  ;;  %v119_v5 = vshrl.u32 %v118_v4, 7  ;;  %v124_v6 = vand.u32 127, %v118_v4  ;;  %v283_v11 = vmov 0   ;;  %p209_p2 = scmp.le.s32.totalorder %s344_s0, 0 }
  0x27   :  { %223 = vset.pattern.permute.xlu0 %v283_v11 }
  0x28   :  { %vm127_vm2 = vcmp.eq.s32.totalorder %v119_v5, %v124_v6  ;;  %vm128_vm3 = vcmp.ge.s32.totalorder %v124_v6, 8  ;;  %vm167_vm6 = vcmp.lt.s32.totalorder (!%p209_p2), %v119_v5, 4  ;;  %v168_v27 = vadd.s32 (!%p209_p2), 4, %v119_v5 }
  0x29   :  { %215 = vmatmul.mubr.f32.vlgmr.msra.gmra.mrb[0].mxu0 %v45_v2  ;;  %vm131_vm4 = vmor %vm127_vm2, %vm128_vm3  ;;  %v173_v28 = vand.u32 (!%p209_p2), 3, %v119_v5 }
  0x2b   :  { %v181_v29 = vsel (!%p209_p2), %vm167_vm6, %v168_v27, %v173_v28 }
  0x2c   :  { %v142_v23 = vld [vmem:[#allocation3] sm:$0xff]  ;;  %vm183_vm7 = vcmp.eq.s32.totalorder (!%p209_p2), %v124_v6, %v181_v29  ;;  %v182_v32 = vld [vmem:[#allocation4] sm:$0xff] (!%p209_p2) }
  0x2d   :  { %v133_v12 = vld [vmem:[#allocation2] sm:$0xff] }
  0xfc   :  { %v113_v7 = vpop.f32.mrb[0].mxu0 }
  0xfd   :  { %v132_v8 = vsel %vm131_vm4, -1e+30, %v113_v7  ;;  %v216_v9 = vpop.f32.mrb[1].mxu0  ;;  %v184_v30 = vsel (!%p209_p2), %vm183_vm7, %v113_v7, 0.0 }
  0xfe   :  { %v135_v10 = vsel %vm134_vm5, %v132_v8, -inf  ;;  %v185_v31 = vsel (!%p209_p2), %vm134_vm5, %v184_v30, 0.0 }
  0xff   :  { %136 = vmax.xlane.f32.xlu0 %v135_v10 }
 0x18c   :  { %v137_v13 = vpop.xlane.xlu0 %136 }
 0x18d   :  { %v138_v14 = vmax.f32 %v133_v12, %v137_v13 }
 0x18f   :  { %v139_v15 = vsub.f32 %v133_v12, %v138_v14  ;;  %158 = vst.msk [vmem:[#allocation2] sm:$0xff] %vm41_vm0, %v138_v14  ;;  %146 = vperm.xlu0 %223, %v138_v14  }
 0x191   :  { %v140_v21 = vmul.f32 1.442695, %v139_v15 }
 0x1ae   :  { %186 = vadd.xlane.f32.xlu0 (!%p209_p2), %v185_v31 }
 0x20e   :  { %v147_v16 = vpop.permute.xlu0 %146 }
 0x20f   :  { %v149_v17 = vsub.f32 %v132_v8, %v147_v16 }
 0x211   :  { %v150_v18 = vmul.f32 1.442695, %v149_v17 }
 0x213   :  { %224 = vpow2.f32 %v150_v18 }
 0x214   :  { %226 = vpow2.f32 %v140_v21 }
 0x21d   :  { %v225_v19 = vpop.eup %224 }
 0x21e   :  { %v152_v20 = vsel %vm134_vm5, %v225_v19, 0.0  ;;  %v227_v22 = vpop.eup %226 }
 0x21f   :  { %153 = vadd.xlane.f32.xlu1 %v152_v20  ;;  %v143_v24 = vmul.f32 %v227_v22, %v142_v23 }
 0x23b   :  { %v187_v33 = vpop.xlane.xlu0 (!%p209_p2), %186 }
 0x23c   :  { %v188_v34 = vadd.f32 (!%p209_p2), %v187_v33, %v182_v32 }
 0x23e   :  { %189 = vst.msk [vmem:[#allocation4] sm:$0xff] (!%p209_p2), %vm41_vm0, %v188_v34 }
 0x2a9   :  { %166 = sbr.rel (%p209_p2) target bundleno = 688 (0x2b0), region = 25 }
 0x2ac   :  { %v154_v25 = vpop.xlane.xlu1 %153 }
 0x2ad   :  { %v155_v26 = vadd.f32 %v154_v25, %v143_v24 }
 0x2af   :  { %157 = vst.msk [vmem:[#allocation3] sm:$0xff] %vm41_vm0, %v155_v26 }
 0x2b0 PF:  { %v193_v37 = vld [vmem:[#allocation2] sm:$0xff]  ;;  %v198_v39 = vld [vmem:[#allocation4] sm:$0xff] }
 0x2b6   :  { %v194_v35 = vld [vmem:[#allocation3] sm:$0xff] }
 0x2b7   :  { %228 = vlog2.f32 %v194_v35 }
 0x2c1   :  { %v229_v36 = vpop.eup %228 }
 0x2c2   :  { %v196_v38 = vmul.f32 0.6931472, %v229_v36 }
 0x2c4   :  { %v197_v40 = vadd.f32 %v196_v38, %v193_v37 }
 0x2c6   :  { %v199_v41 = vsub.f32 %v197_v40, %v198_v39 }
 0x2c8   :  { %202 = vst.msk [vmem:[%s347_s3] sm:$0xff] %vm41_vm0, %v199_v41 }
 0x2c9   :  { %207 = vsyncpa [#allocation8], 1 }
 0x2ca   :  { %208 = vsyncpa [#allocation10], 1 }

</bundles_post_ra>
